<compile_context>
chip_gen: v6e
topology: v6e:2x2x1
jax: 0.10.0
libtpu: 0.0.40
codegen_flags: <defaults>
</compile_context>

<pallas_src>
import jax
import jax.numpy as jnp
from jax import lax
from jax.experimental import pallas as pl
from jax.experimental.pallas import tpu as pltpu


# ----------------------------- kernels -------------------------------------


def _make_pool_kernel(HW, hw_tile):
    """Per-row spatial-sum kernel over a (row_tile, hw_tile) block."""
    ragged = (HW % hw_tile) != 0

    def pool_kernel(x_ref, sum_ref, acc_ref):
        t = pl.program_id(1)

        @pl.when(t == 0)
        def _():
            acc_ref[...] = jnp.zeros_like(acc_ref)

        x = x_ref[...].astype(jnp.float32)          # (row_tile, hw_tile)
        if ragged:
            # Last HW block is partial: its OOB lanes contain garbage and
            # must be zeroed before reducing.  (Trace-time flag: when HW is
            # divisible by hw_tile this code does not exist at all.)
            lane = lax.broadcasted_iota(jnp.int32, x.shape, 1)
            x = jnp.where(t * hw_tile + lane < HW, x, 0.0)

        # Binary lane fold down to one 128-lane vreg width: pure VPU adds
        # (lane-aligned static slices), no per-block XLU reduce.
        w = x.shape[-1]
        while w > 128:
            w //= 2
            x = x[:, :w] + x[:, w:]
        acc_ref[...] += x

        @pl.when(t == pl.num_programs(1) - 1)
        def _():
            # Single cross-lane reduce per row group.
            sum_ref[...] = jnp.sum(acc_ref[...], axis=-1, keepdims=True)

    return pool_kernel


def scale_kernel(x_ref, gate_ref, o_ref):
    """o = x * gate; gate is (row_tile, 1) already in x's dtype."""
    o_ref[...] = x_ref[...] * gate_ref[...]


# ----------------------------- tiling ---------------------------------------


def _choose_tiles(RBC, HW, itemsize, target_bytes):
    """Pick (row_tile, hw_tile) for the flattened (B*C, HW) layout.

    row_tile: multiple of 8 (or the full row count when RBC <= 8), capped at
    256 so the row axis still exposes megacore parallelism.
    hw_tile: 128 * 2**k lanes (power of two keeps the in-kernel lane fold
    128-aligned), grown toward the per-block byte target but no larger than
    needed to cover HW.
    """
    if RBC <= 8:
        row_tile = RBC
    else:
        row_tile = min(max(8, (RBC // 8) * 8), 256)

    hw_cap = pl.cdiv(HW, 128) * 128
    lane_budget = max(128, target_bytes // max(1, row_tile * itemsize))
    hw_tile = 128
    while hw_tile * 2 <= lane_budget and hw_tile < hw_cap:
        hw_tile *= 2
    return row_tile, hw_tile


# ----------------------------- wrapper --------------------------------------


def senet_forward(x, w1, b1, w2, b2, *, target_block_bytes=8 * 1024 * 1024):
    """SENet forward.  x: (B, C, H, W); w1: (C//2, C); b1: (C//2,);
    w2: (C, C//2); b2: (C,)."""
    B, C, H, W = x.shape
    HW = H * W
    RBC = B * C
    out_dtype = x.dtype
    itemsize = jnp.dtype(out_dtype).itemsize

    row_tile, hw_tile = _choose_tiles(RBC, HW, itemsize, target_block_bytes)
    n_r = pl.cdiv(RBC, row_tile)
    n_t = pl.cdiv(HW, hw_tile)

    # Free reshape (contiguous layout): no extra HBM traffic.
    x2 = x.reshape(RBC, HW)

    # (in 8 + out 8) MiB x 2 buffers = 32 MiB worst case; 40 MiB cap leaves
    # headroom and stays well inside v7x's 64 MiB physical VMEM.
    vmem_cap = 40 * 1024 * 1024

    # ---- Pass 1: per-(b, c) spatial sums, f32 accumulation ----
    sums = pl.pallas_call(
        _make_pool_kernel(HW, hw_tile),
        out_shape=jax.ShapeDtypeStruct((RBC, 1), jnp.float32),
        grid_spec=pltpu.PrefetchScalarGridSpec(
            num_scalar_prefetch=0,
            grid=(n_r, n_t),
            in_specs=[pl.BlockSpec((row_tile, hw_tile), lambda r, t: (r, t))],
            out_specs=pl.BlockSpec((row_tile, 1), lambda r, t: (r, 0)),
            scratch_shapes=[pltpu.VMEM((row_tile, 128), jnp.float32)],
        ),
        compiler_params=pltpu.CompilerParams(
            dimension_semantics=("parallel", "arbitrary"),
            vmem_limit_bytes=vmem_cap),
    )(x2)

    # ---- Gate: AdaptiveAvgPool mean -> 1x1 conv+ReLU -> 1x1 conv+ReLU ->
    #      sigmoid.  Tiny (B, C) matmuls, plain JAX in f32. ----
    pooled = sums.reshape(B, C) * jnp.float32(1.0 / HW)                  # (B, C)
    h = jax.nn.relu(pooled @ w1.astype(jnp.float32).T
                    + b1.astype(jnp.float32)[None, :])                   # (B, C//2)
    e = jax.nn.relu(h @ w2.astype(jnp.float32).T
                    + b2.astype(jnp.float32)[None, :])                   # (B, C)
    # Pre-cast gate to x's dtype so pass 2 multiplies natively (no f32
    # round trip per element).  Note: for bf16 x this rounds the gate to bf16
    # (reference promotes); test-tolerance consideration only.
    gate = jax.nn.sigmoid(e).astype(out_dtype).reshape(RBC, 1)

    # ---- Pass 2: stream x * gate, both grid axes parallel ----
    out = pl.pallas_call(
        scale_kernel,
        out_shape=jax.ShapeDtypeStruct((RBC, HW), out_dtype),
        grid_spec=pltpu.PrefetchScalarGridSpec(
            num_scalar_prefetch=0,
            grid=(n_r, n_t),
            in_specs=[
                pl.BlockSpec((row_tile, hw_tile), lambda r, t: (r, t)),
                pl.BlockSpec((row_tile, 1), lambda r, t: (r, 0)),
            ],
            out_specs=pl.BlockSpec((row_tile, hw_tile), lambda r, t: (r, t)),
        ),
        compiler_params=pltpu.CompilerParams(
            dimension_semantics=("parallel", "parallel"),
            vmem_limit_bytes=vmem_cap),
    )(x2, gate)

    return out.reshape(B, C, H, W)


# ----------------------------- reference ------------------------------------


def senet_reference(x, w1, b1, w2, b2):
    """Pure-JAX reference mirroring the PyTorch forward."""
    pooled = jnp.mean(x, axis=(2, 3), keepdims=True)                     # (B, C, 1, 1)
    h = jax.nn.relu(jnp.einsum('oc,bcij->boij', w1, pooled)
                    + b1[None, :, None, None])
    e = jax.nn.relu(jnp.einsum('oc,bcij->boij', w2, h)
                    + b2[None, :, None, None])
    gate = jax.nn.sigmoid(e)                                             # (B, C, 1, 1)
    return x * gate


if __name__ == "__main__":
    B, C, H, W = 2, 4, 16, 16      # in_dim = 4
    key = jax.random.PRNGKey(0)
    kx, k1, k2, k3, k4 = jax.random.split(key, 5)

    x = jax.random.normal(kx, (B, C, H, W), dtype=jnp.float32)
    # conv1: Conv2d(C, C//2, 1) -> weight (C//2, C), bias (C//2,)
    w1 = jax.random.normal(k1, (C // 2, C), dtype=jnp.float32) * 0.5
    b1 = jax.random.normal(k2, (C // 2,), dtype=jnp.float32) * 0.1
    # conv2: Conv2d(C//2, C, 1) -> weight (C, C//2), bias (C,)
    w2 = jax.random.normal(k3, (C, C // 2), dtype=jnp.float32) * 0.5
    b2 = jax.random.normal(k4, (C,), dtype=jnp.float32) * 0.1

    out = jax.block_until_ready(senet_forward(x, w1, b1, w2, b2))

    ref = senet_reference(x, w1, b1, w2, b2)
    assert out.shape == (B, C, H, W)
    assert jnp.allclose(out, ref, atol=1e-5, rtol=1e-5)

    print("KERNEL_OK")
</pallas_src>

<mosaic_0001>
module attributes {stable_mosaic.version = 11 : i64} {
  func.func @pool_kernel(%arg0: i32, %arg1: i32, %arg2: memref<8x256xf32, #tpu.memory_space<vmem>>, %arg3: memref<8x1xf32, #tpu.memory_space<vmem>>, %arg4: memref<8x128xf32, #tpu.memory_space<vmem>>) attributes {dimension_semantics = [#tpu.dimension_semantics<parallel>, #tpu.dimension_semantics<arbitrary>], iteration_bounds = array<i64: 1, 1>, scalar_prefetch = 0 : i64, scratch_operands = 1 : i64, tpu.core_type = #tpu.core_type<tc>, window_params = [{transform_indices = @transform_0, window_bounds = array<i64: 8, 256>}, {transform_indices = @transform_1, window_bounds = array<i64: 8, 1>}]} {
    %c0_i32 = arith.constant 0 : i32
    %0 = arith.cmpi eq, %arg1, %c0_i32 : i32
    %1 = arith.extui %0 : i1 to i32
    %c0_i32_0 = arith.constant 0 : i32
    %2 = arith.cmpi ne, %1, %c0_i32_0 : i32
    scf.if %2 {
      %cst = arith.constant 0.000000e+00 : f32
      %13 = vector.broadcast %cst : f32 to vector<8x128xf32>
      %c0_8 = arith.constant 0 : index
      %c0_9 = arith.constant 0 : index
      %14 = vector.load %arg4[%c0_8, %c0_9] : memref<8x128xf32, #tpu.memory_space<vmem>>, vector<8x128xf32>
      tpu.vector_store %arg4[%c0_8, %c0_9], %13 {strides = array<i32>} : memref<8x128xf32, #tpu.memory_space<vmem>>, vector<8x128xf32>,
    } else {
    }
    %c0 = arith.constant 0 : index
    %c0_1 = arith.constant 0 : index
    %3 = vector.load %arg2[%c0, %c0_1] : memref<8x256xf32, #tpu.memory_space<vmem>>, vector<8x256xf32>
    %4 = vector.extract_strided_slice %3 {offsets = [0, 0], sizes = [8, 128], strides = [1, 1]} : vector<8x256xf32> to vector<8x128xf32>
    %5 = vector.extract_strided_slice %3 {offsets = [0, 128], sizes = [8, 128], strides = [1, 1]} : vector<8x256xf32> to vector<8x128xf32>
    %6 = arith.addf %4, %5 : vector<8x128xf32>
    %c0_2 = arith.constant 0 : index
    %c0_3 = arith.constant 0 : index
    %7 = vector.load %arg4[%c0_2, %c0_3] : memref<8x128xf32, #tpu.memory_space<vmem>>, vector<8x128xf32>
    %8 = arith.addf %7, %6 : vector<8x128xf32>
    %c0_4 = arith.constant 0 : index
    %c0_5 = arith.constant 0 : index
    %9 = vector.load %arg4[%c0_4, %c0_5] : memref<8x128xf32, #tpu.memory_space<vmem>>, vector<8x128xf32>
    tpu.vector_store %arg4[%c0_4, %c0_5], %8 {strides = array<i32>} : memref<8x128xf32, #tpu.memory_space<vmem>>, vector<8x128xf32>,
    %c0_i32_6 = arith.constant 0 : i32
    %10 = arith.cmpi eq, %arg1, %c0_i32_6 : i32
    %11 = arith.extui %10 : i1 to i32
    %c0_i32_7 = arith.constant 0 : i32
    %12 = arith.cmpi ne, %11, %c0_i32_7 : i32
    scf.if %12 {
      %c0_8 = arith.constant 0 : index
      %c0_9 = arith.constant 0 : index
      %13 = vector.load %arg4[%c0_8, %c0_9] : memref<8x128xf32, #tpu.memory_space<vmem>>, vector<8x128xf32>
      %cst = arith.constant dense<0.000000e+00> : vector<8xf32>
      %14 = vector.multi_reduction <add>, %13, %cst [1] : vector<8x128xf32> to vector<8xf32>
      %15 = vector.shape_cast %14 : vector<8xf32> to vector<8x1xf32>
      %c0_10 = arith.constant 0 : index
      %c0_11 = arith.constant 0 : index
      %16 = vector.load %arg3[%c0_10, %c0_11] : memref<8x1xf32, #tpu.memory_space<vmem>>, vector<8x1xf32>
      tpu.vector_store %arg3[%c0_10, %c0_11], %15 {strides = array<i32>} : memref<8x1xf32, #tpu.memory_space<vmem>>, vector<8x1xf32>,
    } else {
    }
    return
  }
  func.func @transform_0(%arg0: i32, %arg1: i32) -> (i32, i32) {
    %c0_i32 = arith.constant 0 : i32
    return %arg0, %arg1 : i32, i32
  }
  func.func @transform_1(%arg0: i32, %arg1: i32) -> (i32, i32) {
    %c0_i32 = arith.constant 0 : i32
    %c0_i32_0 = arith.constant 0 : i32
    return %arg0, %c0_i32 : i32, i32
  }
}

</mosaic_0001>

<bundles_post_ra>
// kernel: tpu_custom_call.1
= control target key start
LH: loop header
LB: loop body
LE: loop exit
PB: predicated region body
PF: predicated region fallthrough
CT: control target
= control target key end

     0   :  { %6 = vsyncpa [#allocation4], 0  ;;  %s67_s6 = smov [#allocation3]   ;;  %s84_s0 = inlined_call_operand.hbm [shape: f32[8,256], index: 0, kind: input, shape index: {}]   ;;  %s85_s1 = inlined_call_operand.vmem [shape: f32[8,1], index: 1, kind: output, shape index: {}]  }
   0x1   :  { %s13_s7 = sshll.u32 %s67_s6, 4  ;;  %s14_s7 = int_to_ptr.vmem [resolvable:$true] %s13_s7 }
   0x2   :  { %s53_s8 = scalar_lea.vmem %s14_s7, 256  ;;  %p58_p1 = scmp.lt.s32.totalorder %s14_s7, %s14_s7 }
   0x3   :  { %p54_p0 = scmp.ne.s32.totalorder %s14_s7, %s53_s8  ;;  %p59_p2 = scmp.lt.s32.totalorder %s53_s8, %s53_s8 }
   0x5   :  { %p60_p3 = por %p59_p2, %p58_p1 }
   0x7   :  { %p61_p4 = pnand %p60_p3, %p54_p0 }
   0x9   :  { %64 = shalt.err (!%p61_p4)
}
   0xa   :  { %16 = dma.hbm_to_vmem [thread:$0]  %s84_s0, 256, %s14_s7, [#allocation4]  }
   0xb   :  { %65 = dma.done.wait [#allocation4], 256  }
   0xc   :  { %66 = vsyncadd [#allocation4], 4294967040  ;;  %v25_v0 = vld [vmem:[#allocation3] sm:$0xff]  ;;  %v26_v1 = vld [vmem:[#allocation3 + $0x8] sm:$0xff]  ;;  %vm37_vm0 = vcmask 7168  }
   0xd   :  { %v27_v2 = vadd.f32 %v26_v1, %v25_v0 }
   0xf   :  { %35 = vadd.xlane.f32.xlu0 %v27_v2 }
  0x98   :  { %v36_v3 = vpop.xlane.xlu0 %35 }
  0x99   :  { %38 = vst.msk [vmem:[%s85_s1] sm:$0xff] %vm37_vm0, %v36_v3 }
  0x9a   :  { %43 = vsyncpa [#allocation4], 1 }

</bundles_post_ra>
